<compile_context>
chip_gen: v6e
topology: v6e:2x2x1
jax: 0.10.0
libtpu: 0.0.40
codegen_flags: <defaults>
</compile_context>

<pallas_src>
import jax
import jax.numpy as jnp
from jax.experimental import pallas as pl
from jax.experimental.pallas import tpu as pltpu


AGENT_INPUT_DIM = 4
HIDDEN_DIM = 32
FUTURE_FRAMES = 6
OUT_DIM = FUTURE_FRAMES * 2  # 12

# Rows (agents) per grid step.  Natural-layout tiles lane-pad 4->128 and
# 12->128, so 8192 rows => ~8 MiB (in, x2 buffers) + ~8 MiB (out, x2) +
# ~4 MiB hidden scratch ~= 20-25 MiB: amortises per-step overhead while
# staying well inside v7x's 64 MiB physical VMEM.
ROW_TILE = 8192
VMEM_LIMIT_BYTES = 48 * 1024 * 1024  # raise v5e/v6e default scoped limit


def _round_up(x, m):
    return ((x + m - 1) // m) * m


def _mlp_kernel(x_ref, w1t_ref, b1_ref, w2t_ref, b2_ref, o_ref):
    # x:   (Rt, 4)     w1t: (4, 32)    b1: (1, 32)
    # w2t: (32, 12)    b2:  (1, 12)    o:  (Rt, 12)
    x = x_ref[...]
    h = jnp.dot(x, w1t_ref[...], preferred_element_type=jnp.float32) + b1_ref[...]
    h = jnp.maximum(h, 0.0)  # ReLU (VPU)
    out = jnp.dot(h, w2t_ref[...], preferred_element_type=jnp.float32) + b2_ref[...]
    o_ref[...] = out.astype(o_ref.dtype)


def baseline_model_forward(agent_features, spatial_motif, temporal_motif, adj, params):
    """agent_features: (B, N, agent_input_dim) float32.
    spatial_motif / temporal_motif / adj are accepted for signature parity but
    (as in the PyTorch reference forward) unused.
    Returns preds: (B, N, FUTURE_FRAMES, 2) float32.
    """
    del spatial_motif, temporal_motif, adj  # unused by the reference forward
    B, N, D = agent_features.shape
    assert D == AGENT_INPUT_DIM
    R = B * N

    # PyTorch nn.Linear layout: w (out_features, in_features), b (out_features,).
    # Pre-transpose the tiny weights once (a few KiB) so the kernel does
    # natural-layout x @ W^T math; biases become row vectors that broadcast
    # over the row (sublane) axis inside the kernel.
    w1t = params["w1"].T                       # (4, 32)
    w2t = params["w2"].T                       # (32, 12)
    b1r = params["b1"].reshape(1, HIDDEN_DIM)  # (1, 32)
    b2r = params["b2"].reshape(1, OUT_DIM)     # (1, 12)

    # Row tile: ROW_TILE for large inputs, otherwise one 8-row-aligned tile.
    Rt = min(ROW_TILE, _round_up(R, 8))
    R_pad = _round_up(R, Rt)

    x = agent_features.reshape(R, D)           # metadata-only reshape
    if R_pad != R:
        # Zero-pad extra rows (16 B/row, only on the ragged tail); the garbage
        # rows they produce are sliced off below before the final reshape.
        x = jnp.pad(x, ((0, R_pad - R), (0, 0)))

    grid = (R_pad // Rt,)

    flops = 2 * R_pad * (D * HIDDEN_DIM + HIDDEN_DIM * OUT_DIM)
    bytes_accessed = 4 * (
        R_pad * (D + OUT_DIM)
        + D * HIDDEN_DIM + HIDDEN_DIM
        + HIDDEN_DIM * OUT_DIM + OUT_DIM
    )

    out = pl.pallas_call(
        _mlp_kernel,
        out_shape=jax.ShapeDtypeStruct((R_pad, OUT_DIM), jnp.float32),
        grid=grid,
        in_specs=[
            pl.BlockSpec((Rt, D), lambda i: (i, 0)),                  # x row tile
            pl.BlockSpec((D, HIDDEN_DIM), lambda i: (0, 0)),          # W1^T (resident)
            pl.BlockSpec((1, HIDDEN_DIM), lambda i: (0, 0)),          # b1   (resident)
            pl.BlockSpec((HIDDEN_DIM, OUT_DIM), lambda i: (0, 0)),    # W2^T (resident)
            pl.BlockSpec((1, OUT_DIM), lambda i: (0, 0)),             # b2   (resident)
        ],
        out_specs=pl.BlockSpec((Rt, OUT_DIM), lambda i: (i, 0)),
        compiler_params=pltpu.CompilerParams(
            dimension_semantics=("parallel",),      # megacore / dual-TC shardable
            vmem_limit_bytes=VMEM_LIMIT_BYTES,      # v5e default (16 MiB) too small
        ),
        cost_estimate=pl.CostEstimate(
            flops=flops, transcendentals=0, bytes_accessed=bytes_accessed),
    )(x, w1t, b1r, w2t, b2r)

    if R_pad != R:
        out = out[:R]
    # (R, 12) row-major -> (B, N, 6, 2) is a metadata-only reshape: no extra
    # HBM pass (the previous version's (12, R) -> (R, 12) transpose is gone).
    return out.reshape(B, N, FUTURE_FRAMES, 2)


def init_params(key):
    """Deterministic synthetic parameters in PyTorch nn.Linear layout:
    w: (out_features, in_features), b: (out_features,)."""
    k1, k2, k3, k4 = jax.random.split(key, 4)
    bound1 = 1.0 / jnp.sqrt(AGENT_INPUT_DIM)
    bound2 = 1.0 / jnp.sqrt(HIDDEN_DIM)
    w1 = jax.random.uniform(k1, (HIDDEN_DIM, AGENT_INPUT_DIM), jnp.float32,
                            -bound1, bound1)
    b1 = jax.random.uniform(k2, (HIDDEN_DIM,), jnp.float32, -bound1, bound1)
    w2 = jax.random.uniform(k3, (OUT_DIM, HIDDEN_DIM), jnp.float32,
                            -bound2, bound2)
    b2 = jax.random.uniform(k4, (OUT_DIM,), jnp.float32, -bound2, bound2)
    return {"w1": w1, "b1": b1, "w2": w2, "b2": b2}


if __name__ == "__main__":
    key = jax.random.PRNGKey(0)
    kp, kx, ks, kt, ka = jax.random.split(key, 5)

    B, N = 2, 8
    agent_features = jax.random.normal(kx, (B, N, AGENT_INPUT_DIM), jnp.float32)
    # Unused by the forward pass but part of the signature:
    spatial_motif = jax.random.normal(ks, (B, N, N), jnp.float32)
    temporal_motif = jax.random.normal(kt, (B, N, N), jnp.float32)
    adj = (jax.random.uniform(ka, (B, N, N)) > 0.5).astype(jnp.float32)

    params = init_params(kp)

    preds = baseline_model_forward(agent_features, spatial_motif,
                                   temporal_motif, adj, params)
    preds = jax.block_until_ready(preds)

    # Pure-JAX reference check (PyTorch-equivalent math, f32).
    x = agent_features.reshape(B * N, AGENT_INPUT_DIM)
    h = jnp.maximum(x @ params["w1"].T + params["b1"], 0.0)
    ref = (h @ params["w2"].T + params["b2"]).reshape(B, N, FUTURE_FRAMES, 2)
    assert preds.shape == (B, N, FUTURE_FRAMES, 2)
    assert jnp.allclose(preds, ref, atol=1e-5, rtol=1e-5)

    print("KERNEL_OK")
</pallas_src>

<mosaic_0001>
module attributes {stable_mosaic.version = 11 : i64} {
  func.func @_mlp_kernel(%arg0: i32, %arg1: memref<16x4xf32, #tpu.memory_space<vmem>>, %arg2: memref<4x32xf32, #tpu.memory_space<vmem>>, %arg3: memref<1x32xf32, #tpu.memory_space<vmem>>, %arg4: memref<32x12xf32, #tpu.memory_space<vmem>>, %arg5: memref<1x12xf32, #tpu.memory_space<vmem>>, %arg6: memref<16x12xf32, #tpu.memory_space<vmem>>) attributes {dimension_semantics = [#tpu.dimension_semantics<parallel>], iteration_bounds = array<i64: 1>, scalar_prefetch = 0 : i64, scratch_operands = 0 : i64, tpu.core_type = #tpu.core_type<tc>, window_params = [{transform_indices = @transform_0, window_bounds = array<i64: 16, 4>}, {pipeline_mode = #tpu.pipeline_mode<synchronous>, transform_indices = @transform_1, window_bounds = array<i64: 4, 32>}, {pipeline_mode = #tpu.pipeline_mode<synchronous>, transform_indices = @transform_2, window_bounds = array<i64: 1, 32>}, {pipeline_mode = #tpu.pipeline_mode<synchronous>, transform_indices = @transform_3, window_bounds = array<i64: 32, 12>}, {pipeline_mode = #tpu.pipeline_mode<synchronous>, transform_indices = @transform_4, window_bounds = array<i64: 1, 12>}, {transform_indices = @transform_5, window_bounds = array<i64: 16, 12>}]} {
    %c0 = arith.constant 0 : index
    %c0_0 = arith.constant 0 : index
    %0 = vector.load %arg1[%c0, %c0_0] : memref<16x4xf32, #tpu.memory_space<vmem>>, vector<16x4xf32>
    %c0_1 = arith.constant 0 : index
    %c0_2 = arith.constant 0 : index
    %1 = vector.load %arg2[%c0_1, %c0_2] : memref<4x32xf32, #tpu.memory_space<vmem>>, vector<4x32xf32>
    %cst = arith.constant dense<0.000000e+00> : vector<16x32xf32>
    %2 = tpu.matmul %0, %1, %cst {dimension_numbers = #tpu.dot_dimension_numbers<[1], [0], [0], [1], [0, 0, 1, 1], [], []>} : vector<16x4xf32>, vector<4x32xf32>, vector<16x32xf32> -> vector<16x32xf32>
    %c0_3 = arith.constant 0 : index
    %c0_4 = arith.constant 0 : index
    %3 = vector.load %arg3[%c0_3, %c0_4] : memref<1x32xf32, #tpu.memory_space<vmem>>, vector<1x32xf32>
    %4 = vector.broadcast %3 : vector<1x32xf32> to vector<16x32xf32>
    %5 = arith.addf %2, %4 : vector<16x32xf32>
    %cst_5 = arith.constant 0.000000e+00 : f32
    %6 = vector.broadcast %cst_5 : f32 to vector<16x32xf32>
    %7 = arith.maximumf %5, %6 : vector<16x32xf32>
    %c0_6 = arith.constant 0 : index
    %c0_7 = arith.constant 0 : index
    %8 = vector.load %arg4[%c0_6, %c0_7] : memref<32x12xf32, #tpu.memory_space<vmem>>, vector<32x12xf32>
    %cst_8 = arith.constant dense<0.000000e+00> : vector<16x12xf32>
    %9 = tpu.matmul %7, %8, %cst_8 {dimension_numbers = #tpu.dot_dimension_numbers<[1], [0], [0], [1], [0, 0, 1, 1], [], []>} : vector<16x32xf32>, vector<32x12xf32>, vector<16x12xf32> -> vector<16x12xf32>
    %c0_9 = arith.constant 0 : index
    %c0_10 = arith.constant 0 : index
    %10 = vector.load %arg5[%c0_9, %c0_10] : memref<1x12xf32, #tpu.memory_space<vmem>>, vector<1x12xf32>
    %11 = vector.broadcast %10 : vector<1x12xf32> to vector<16x12xf32>
    %12 = arith.addf %9, %11 : vector<16x12xf32>
    %c0_11 = arith.constant 0 : index
    %c0_12 = arith.constant 0 : index
    %13 = vector.load %arg6[%c0_11, %c0_12] : memref<16x12xf32, #tpu.memory_space<vmem>>, vector<16x12xf32>
    tpu.vector_store %arg6[%c0_11, %c0_12], %12 {strides = array<i32>} : memref<16x12xf32, #tpu.memory_space<vmem>>, vector<16x12xf32>,
    return
  }
  func.func @transform_0(%arg0: i32) -> (i32, i32) {
    %c0_i32 = arith.constant 0 : i32
    %c0_i32_0 = arith.constant 0 : i32
    return %arg0, %c0_i32 : i32, i32
  }
  func.func @transform_1(%arg0: i32) -> (i32, i32) {
    %c0_i32 = arith.constant 0 : i32
    %c0_i32_0 = arith.constant 0 : i32
    %c0_i32_1 = arith.constant 0 : i32
    return %c0_i32, %c0_i32_0 : i32, i32
  }
  func.func @transform_2(%arg0: i32) -> (i32, i32) {
    %c0_i32 = arith.constant 0 : i32
    %c0_i32_0 = arith.constant 0 : i32
    %c0_i32_1 = arith.constant 0 : i32
    return %c0_i32, %c0_i32_0 : i32, i32
  }
  func.func @transform_3(%arg0: i32) -> (i32, i32) {
    %c0_i32 = arith.constant 0 : i32
    %c0_i32_0 = arith.constant 0 : i32
    %c0_i32_1 = arith.constant 0 : i32
    return %c0_i32, %c0_i32_0 : i32, i32
  }
  func.func @transform_4(%arg0: i32) -> (i32, i32) {
    %c0_i32 = arith.constant 0 : i32
    %c0_i32_0 = arith.constant 0 : i32
    %c0_i32_1 = arith.constant 0 : i32
    return %c0_i32, %c0_i32_0 : i32, i32
  }
  func.func @transform_5(%arg0: i32) -> (i32, i32) {
    %c0_i32 = arith.constant 0 : i32
    %c0_i32_0 = arith.constant 0 : i32
    return %arg0, %c0_i32 : i32, i32
  }
}

</mosaic_0001>

<bundles_post_ra>
// kernel: tpu_custom_call.1
= control target key start
LH: loop header
LB: loop body
LE: loop exit
PB: predicated region body
PF: predicated region fallthrough
CT: control target
= control target key end

     0   :  { %vm38_vm0 = vcmask 1043456   ;;  %vm31_vm1 = vcmask 31744   ;;  %s351_s0 = inlined_call_operand.vmem [shape: f32[16,4], index: 0, kind: input, shape index: {}]   ;;  %s352_s1 = inlined_call_operand.vmem [shape: f32[4,32], index: 1, kind: input, shape index: {}]   ;;  %s353_s2 = inlined_call_operand.vmem [shape: f32[1,32], index: 2, kind: input, shape index: {}]   ;;  %s354_s3 = inlined_call_operand.vmem [shape: f32[32,12], index: 3, kind: input, shape index: {}]   ;;  %s355_s4 = inlined_call_operand.vmem [shape: f32[1,12], index: 4, kind: input, shape index: {}]   ;;  %s356_s5 = inlined_call_operand.hbm [shape: f32[16,12], index: 5, kind: output, shape index: {}]  }
   0x1   :  { %v23_v0 = vld [vmem:[%s352_s1] sm:$0xf]  ;;  %v22_v2 = vld [vmem:[%s351_s0 + $0x8] sm:$0xff] }
   0x2   :  { %v21_v1 = vld [vmem:[%s351_s0] sm:$0xff]  ;;  %247 = vmatprep.subr.msk.mxu0 %vm38_vm0, %v23_v0 }
   0x3   :  { %249 = vmatprep.mubr.msk.f32.mxu0 %vm31_vm1, %v21_v1 }
   0x4   :  { %10 = vsyncpa [#allocation3], 0  ;;  %248 = vmatpush3.msk.msra.mxu0 %vm38_vm0, %v23_v0  ;;  %v122_v3 = vld [vmem:[%s354_s3 + $0x18] sm:$0xff]  ;;  %v121_v4 = vld [vmem:[%s354_s3 + $0x10] sm:$0xff]  ;;  %vm130_vm2 = vcmask 261120   ;;  %vm212_vm3 = vcmask 97280  }
   0x5   :  { %250 = vmatmul.mubr.msk.f32.vlgmr.msra.gmra.mxu0 %vm31_vm1, %v22_v2  ;;  %252 = vmatprep.subr.mxu1 %v122_v3  ;;  %v120_v5 = vld [vmem:[%s354_s3 + $0x8] sm:$0xff]  ;;  %v119_v6 = vld [vmem:[%s354_s3] sm:$0xff]  ;;  %s288_s3 = smov [#allocation2]  }
   0x6   :  { %253 = vmatpush3.msra.mxu1 %v122_v3  ;;  %v231_v7 = vld [vmem:[%s353_s2] ss:$0 sm:$0xff]  ;;  %s220_s9 = sshll.u32 %s288_s3, 4  ;;  %s221_s9 = int_to_ptr.vmem [resolvable:$true] %s220_s9 }
   0x7   :  { %254 = vmatprep.subr.mxu1 %v121_v4  ;;  %v235_v14 = vld [vmem:[%s355_s4] ss:$0 sm:$0xff]  ;;  %s266_s2 = scalar_lea.vmem %s221_s9, 256  ;;  %p271_p1 = scmp.lt.s32.totalorder %s221_s9, %s221_s9 }
   0x8   :  { %255 = vmatpush3.msra.mxu1 %v121_v4  ;;  %p267_p0 = scmp.ne.s32.totalorder %s221_s9, %s266_s2  ;;  %p272_p2 = scmp.lt.s32.totalorder %s266_s2, %s266_s2 }
   0x9   :  { %256 = vmatprep.subr.mxu1 %v120_v5 }
   0xa   :  { %257 = vmatpush3.msra.mxu1 %v120_v5  ;;  %p273_p3 = por %p272_p2, %p271_p1 }
   0xb   :  { %258 = vmatprep.subr.mxu1 %v119_v6 }
   0xc   :  { %259 = vmatpush3.msra.mxu1 %v119_v6  ;;  %p274_p4 = pnand %p273_p3, %p267_p0 }
  0xc5   :  { %v251_v8 = vpop.f32.mrf.mxu0 }
  0xc6   :  { %v114_v9 = vadd.f32 %v251_v8, %v231_v7 }
  0xc7   :  { %v108_v10 = vpop.f32.mrf.mxu0 }
  0xc8   :  { %v109_v11 = vadd.f32 %v231_v7, %v108_v10  ;;  %v118_v13 = vmax.f32 %v114_v9, 0.0 }
  0xca   :  { %v117_v12 = vmax.f32 %v109_v11, 0.0 }
  0xcc   :  { %260 = vmatprep.mubr.msk.f32.mxu1 %vm130_vm2, %v117_v12 }
  0xcd   :  { %261 = vmatmul.mubr.msk.f32.vlgmr.msra.gmra.mxu1 %vm130_vm2, %v118_v13 }
 0x18d   :  { %v262_v15 = vpop.f32.mrf.mxu1 }
 0x18e   :  { %v209_v16 = vadd.f32 %v262_v15, %v235_v14 }
 0x18f   :  { %v203_v17 = vpop.f32.mrf.mxu1 }
 0x190   :  { %214 = vst.msk [vmem:[#allocation2 + $0x8] sm:$0xff] %vm212_vm3, %v209_v16  ;;  %v204_v18 = vadd.f32 %v235_v14, %v203_v17 }
 0x192   :  { %213 = vst.msk [vmem:[#allocation2] sm:$0xff] %vm212_vm3, %v204_v18 }
 0x193   :  { %277 = shalt.err (!%p274_p4)
}
 0x194   :  { %s289_s10 = smov 128   ;;  %s290_s11 = smov 8  }
 0x195   :  { %226 = dma.vmem_to_hbm [thread:$0]  %s221_s9, 256, %s356_s5, [#allocation3], %s289_s10, %s289_s10, %s290_s11  }
 0x196   :  { %286 = dma.done.wait [#allocation3], 256  }
 0x197   :  { %287 = vsyncadd [#allocation3], 4294967040 }
 0x198   :  { %230 = vsyncpa [#allocation3], 1 }

</bundles_post_ra>
